<compile_context>
chip_gen: v7x
topology: tpu7x:2x2x1
jax: 0.10.0
libtpu: 0.0.40
codegen_flags: <defaults>
</compile_context>

<pallas_src>
import functools
import math

import jax
import jax.numpy as jnp
from jax import lax
from jax.experimental import pallas as pl
from jax.experimental.pallas import tpu as pltpu


def _cross_attention_kernel(xq_ref, xk_ref, wq_ref, bq_ref, wkv_ref, bkv_ref,
                            mask_ref, out_ref, acc_ref, *, num_heads, head_size):
    """One (batch, query-tile) grid step.

    xq_ref:   (1, TQ, Hq)    query-side activations (current query tile)
    xk_ref:   (1, Sk, Hk)    key/value-side activations (full key sequence)
    wq_ref:   (Hq, A)        query weight, 1/sqrt(d) folded in          (A = nh*d)
    bq_ref:   (1, A)  f32    query bias, 1/sqrt(d) folded in
    wkv_ref:  (Hk, 2A)       [Wk | Wv] fused
    bkv_ref:  (1, 2A) f32    [bk | bv] fused
    mask_ref: (1, TQ, Sk)    attention mask tile (1 = attend, 0 = masked), bf16
    out_ref:  (1, TQ, A)
    acc_ref:  (TQ, A)  f32   VMEM scratch for the concatenated head outputs
    """
    f32 = jnp.float32
    mm = wq_ref.dtype                      # matmul operand dtype (bf16 or f32)
    d = head_size
    A = num_heads * d

    xq = xq_ref[0].astype(mm)              # (TQ, Hq)
    xk = xk_ref[0].astype(mm)              # (Sk, Hk)

    # Fused projections (wide-N MXU matmuls), f32 accumulation; biases added in f32.
    q = jnp.dot(xq, wq_ref[...], preferred_element_type=f32) + bq_ref[...]      # (TQ, A)
    kv = jnp.dot(xk, wkv_ref[...], preferred_element_type=f32) + bkv_ref[...]   # (Sk, 2A)

    # Additive mask: 1 -> 0, 0 -> -10000. Softmax math stays f32 on all chip generations.
    ext = (1.0 - mask_ref[0].astype(f32)) * (-10000.0)                           # (TQ, Sk)

    # scores = q_h @ k_h^T expressed as a last-dim contraction (no explicit transpose).
    qkT_dims = (((1,), (1,)), ((), ()))

    for h in range(num_heads):             # static unroll over heads
        lo = h * d
        qh = q[:, lo:lo + d].astype(mm)            # (TQ, d)
        kh = kv[:, lo:lo + d].astype(mm)           # (Sk, d)
        vh = kv[:, A + lo:A + lo + d].astype(mm)   # (Sk, d)

        s = lax.dot_general(qh, kh, dimension_numbers=qkT_dims,
                            preferred_element_type=f32) + ext                    # (TQ, Sk)

        m = jnp.max(s, axis=-1, keepdims=True)
        e = jnp.exp(s - m)
        denom = jnp.sum(e, axis=-1, keepdims=True)
        p = e * pl.reciprocal(denom, approx=True)

        ctx = jnp.dot(p.astype(mm), vh, preferred_element_type=f32)              # (TQ, d)
        acc_ref[:, lo:lo + d] = ctx

    # Single lane-dense store of the full all_head_size width.
    out_ref[0] = acc_ref[...].astype(out_ref.dtype)


def cross_attention(hidden_states_query, hidden_states_key,
                    wq, bq, wk, bk, wv, bv, attention_mask,
                    *, num_heads, head_size,
                    q_block=128, matmul_dtype=jnp.bfloat16):
    """Pallas forward for CrossAttention.

    hidden_states_query: (B, Sq, Hq) f32
    hidden_states_key:   (B, Sk, Hk) f32
    wq: (Hq, A); wk, wv: (Hk, A)     (transposed vs. nn.Linear), A = num_heads*head_size
    bq/bk/bv: (A,)
    attention_mask: (B, Sq, Sk), 1 = attend, 0 = masked
    returns: (B, Sq, A)
    """
    B, Sq, Hq = hidden_states_query.shape
    Bk, Sk, Hk = hidden_states_key.shape
    assert B == Bk
    A = num_heads * head_size
    assert wq.shape == (Hq, A) and wk.shape == (Hk, A) and wv.shape == (Hk, A)
    assert attention_mask.shape == (B, Sq, Sk)

    # Fold 1/sqrt(d_head) into the query projection; fuse K|V weights and biases.
    scale = 1.0 / math.sqrt(head_size)
    wq_s = (wq * scale).astype(matmul_dtype)
    bq_s = (bq * scale).reshape(1, A).astype(jnp.float32)
    wkv = jnp.concatenate([wk, wv], axis=1).astype(matmul_dtype)            # (Hk, 2A)
    bkv = jnp.concatenate([bk, bv], axis=0).reshape(1, 2 * A).astype(jnp.float32)

    # Tile the query dimension so arbitrarily long Sq stays within VMEM (v7x: 64 MiB)
    # and the (batch, q_tile) grid shards across v7x's two TensorCores.
    if Sq <= q_block:
        tq = Sq                                  # single full-extent tile
        xq = hidden_states_query
        mask = attention_mask
    else:
        tq = q_block                             # multiple of 8, lane-rule compliant
        pad = (-Sq) % tq
        xq = jnp.pad(hidden_states_query, ((0, 0), (0, pad), (0, 0)))
        mask = jnp.pad(attention_mask, ((0, 0), (0, pad), (0, 0)), constant_values=1.0)
    sq_pad = xq.shape[1]
    n_q_tiles = sq_pad // tq

    # Ship the mask as bf16: 0/1 are exact and the O(Sq*Sk) DMA is halved.
    mask = mask.astype(jnp.bfloat16)

    kernel = functools.partial(_cross_attention_kernel,
                               num_heads=num_heads, head_size=head_size)

    # NOTE: weight/bias BlockSpecs are grid-invariant (constant index maps), so they are
    # not re-fetched per grid step; they are small relative to the activation tiles.
    out = pl.pallas_call(
        kernel,
        out_shape=jax.ShapeDtypeStruct((B, sq_pad, A), hidden_states_query.dtype),
        grid_spec=pltpu.PrefetchScalarGridSpec(
            num_scalar_prefetch=0,
            grid=(B, n_q_tiles),
            in_specs=[
                pl.BlockSpec((1, tq, Hq), lambda b, qt: (b, qt, 0)),    # x_query tile
                pl.BlockSpec((1, Sk, Hk), lambda b, qt: (b, 0, 0)),     # x_key (full seq)
                pl.BlockSpec((Hq, A), lambda b, qt: (0, 0)),            # Wq (scaled)
                pl.BlockSpec((1, A), lambda b, qt: (0, 0)),             # bq (scaled)
                pl.BlockSpec((Hk, 2 * A), lambda b, qt: (0, 0)),        # [Wk | Wv]
                pl.BlockSpec((1, 2 * A), lambda b, qt: (0, 0)),         # [bk | bv]
                pl.BlockSpec((1, tq, Sk), lambda b, qt: (b, qt, 0)),    # mask tile (bf16)
            ],
            out_specs=pl.BlockSpec((1, tq, A), lambda b, qt: (b, qt, 0)),
            scratch_shapes=[pltpu.VMEM((tq, A), jnp.float32)],
        ),
        compiler_params=pltpu.CompilerParams(
            dimension_semantics=("parallel", "parallel")),
    )(xq, hidden_states_key, wq_s, bq_s, wkv, bkv, mask)

    if sq_pad != Sq:
        out = out[:, :Sq, :]
    return out


def cross_attention_reference(xq, xk, wq, bq, wk, bk, wv, bv, mask,
                              *, num_heads, head_size):
    """Pure-JAX reference mirroring the PyTorch CrossAttention module."""
    B, Sq, _ = xq.shape
    _, Sk, _ = xk.shape
    q = xq @ wq + bq
    k = xk @ wk + bk
    v = xk @ wv + bv

    def split(x, s):
        return x.reshape(B, s, num_heads, head_size).transpose(0, 2, 1, 3)

    qh, kh, vh = split(q, Sq), split(k, Sk), split(v, Sk)
    scores = jnp.einsum("bhqd,bhkd->bhqk", qh / math.sqrt(head_size), kh)
    scores = scores + (1.0 - mask[:, None, :, :]) * (-10000.0)
    probs = jax.nn.softmax(scores, axis=-1)
    ctx = jnp.einsum("bhqk,bhkd->bhqd", probs, vh)
    return ctx.transpose(0, 2, 1, 3).reshape(B, Sq, num_heads * head_size)


if __name__ == "__main__":
    # Small cross-attention shapes: batch=2, query seq=8, key seq=12,
    # query hidden=32, key hidden=24, num_heads=2 -> head_size=16, all_head_size=32.
    B, Sq, Sk = 2, 8, 12
    Hq, Hk = 32, 24
    num_heads = 2
    head_size = 16
    A = num_heads * head_size

    key = jax.random.PRNGKey(0)
    keys = jax.random.split(key, 8)
    xq = jax.random.normal(keys[0], (B, Sq, Hq), dtype=jnp.float32)
    xk = jax.random.normal(keys[1], (B, Sk, Hk), dtype=jnp.float32)
    wq = jax.random.normal(keys[2], (Hq, A), dtype=jnp.float32) * 0.1
    bq = jax.random.normal(keys[3], (A,), dtype=jnp.float32) * 0.1
    wk = jax.random.normal(keys[4], (Hk, A), dtype=jnp.float32) * 0.1
    bk = jax.random.normal(keys[5], (A,), dtype=jnp.float32) * 0.1
    wv = jax.random.normal(keys[6], (Hk, A), dtype=jnp.float32) * 0.1
    bv = jax.random.normal(keys[7], (A,), dtype=jnp.float32) * 0.1

    # attention mask: 1 = attend, 0 = masked (mask the last 3 key positions for batch 1)
    attention_mask = jnp.ones((B, Sq, Sk), dtype=jnp.float32)
    attention_mask = attention_mask.at[1, :, Sk - 3:].set(0.0)

    out = cross_attention(xq, xk, wq, bq, wk, bk, wv, bv, attention_mask,
                          num_heads=num_heads, head_size=head_size)
    out = jax.block_until_ready(out)

    ref = cross_attention_reference(xq, xk, wq, bq, wk, bk, wv, bv, attention_mask,
                                    num_heads=num_heads, head_size=head_size)

    assert out.shape == (B, Sq, A), out.shape
    # bf16 MXU operands (f32 accumulation) + approx reciprocal -> loosened tolerance.
    max_err = float(jnp.max(jnp.abs(out - ref)))
    assert jnp.allclose(out, ref, atol=3e-2, rtol=3e-2), max_err

    print("KERNEL_OK")
</pallas_src>

<mosaic_0001>
module attributes {stable_mosaic.version = 11 : i64} {
  func.func @_cross_attention_kernel(%arg0: i32, %arg1: i32, %arg2: memref<1x8x32xf32, #tpu.memory_space<vmem>>, %arg3: memref<1x12x24xf32, #tpu.memory_space<vmem>>, %arg4: memref<32x32xbf16, #tpu.memory_space<vmem>>, %arg5: memref<1x32xf32, #tpu.memory_space<vmem>>, %arg6: memref<24x64xbf16, #tpu.memory_space<vmem>>, %arg7: memref<1x64xf32, #tpu.memory_space<vmem>>, %arg8: memref<1x8x12xbf16, #tpu.memory_space<vmem>>, %arg9: memref<1x8x32xf32, #tpu.memory_space<vmem>>, %arg10: memref<8x32xf32, #tpu.memory_space<vmem>>) attributes {dimension_semantics = [#tpu.dimension_semantics<parallel>, #tpu.dimension_semantics<parallel>], iteration_bounds = array<i64: 2, 1>, scalar_prefetch = 0 : i64, scratch_operands = 1 : i64, tpu.core_type = #tpu.core_type<tc>, window_params = [{transform_indices = @transform_0, window_bounds = array<i64: 1, 8, 32>}, {transform_indices = @transform_1, window_bounds = array<i64: 1, 12, 24>}, {pipeline_mode = #tpu.pipeline_mode<synchronous>, transform_indices = @transform_2, window_bounds = array<i64: 32, 32>}, {pipeline_mode = #tpu.pipeline_mode<synchronous>, transform_indices = @transform_3, window_bounds = array<i64: 1, 32>}, {pipeline_mode = #tpu.pipeline_mode<synchronous>, transform_indices = @transform_4, window_bounds = array<i64: 24, 64>}, {pipeline_mode = #tpu.pipeline_mode<synchronous>, transform_indices = @transform_5, window_bounds = array<i64: 1, 64>}, {transform_indices = @transform_6, window_bounds = array<i64: 1, 8, 12>}, {transform_indices = @transform_7, window_bounds = array<i64: 1, 8, 32>}]} {
    %c0 = arith.constant 0 : index
    %c0_0 = arith.constant 0 : index
    %c0_1 = arith.constant 0 : index
    %0 = vector.load %arg2[%c0, %c0_0, %c0_1] : memref<1x8x32xf32, #tpu.memory_space<vmem>>, vector<1x8x32xf32>
    %1 = vector.shape_cast %0 : vector<1x8x32xf32> to vector<8x32xf32>
    %2 = arith.truncf %1 : vector<8x32xf32> to vector<8x32xbf16>
    %c0_2 = arith.constant 0 : index
    %c0_3 = arith.constant 0 : index
    %c0_4 = arith.constant 0 : index
    %3 = vector.load %arg3[%c0_2, %c0_3, %c0_4] : memref<1x12x24xf32, #tpu.memory_space<vmem>>, vector<1x12x24xf32>
    %4 = vector.shape_cast %3 : vector<1x12x24xf32> to vector<12x24xf32>
    %5 = arith.truncf %4 : vector<12x24xf32> to vector<12x24xbf16>
    %c0_5 = arith.constant 0 : index
    %c0_6 = arith.constant 0 : index
    %6 = vector.load %arg4[%c0_5, %c0_6] : memref<32x32xbf16, #tpu.memory_space<vmem>>, vector<32x32xbf16>
    %cst = arith.constant dense<0.000000e+00> : vector<8x32xf32>
    %7 = tpu.matmul %2, %6, %cst {dimension_numbers = #tpu.dot_dimension_numbers<[1], [0], [0], [1], [0, 0, 1, 1], [], []>} : vector<8x32xbf16>, vector<32x32xbf16>, vector<8x32xf32> -> vector<8x32xf32>
    %c0_7 = arith.constant 0 : index
    %c0_8 = arith.constant 0 : index
    %8 = vector.load %arg5[%c0_7, %c0_8] : memref<1x32xf32, #tpu.memory_space<vmem>>, vector<1x32xf32>
    %9 = vector.broadcast %8 : vector<1x32xf32> to vector<8x32xf32>
    %10 = arith.addf %7, %9 : vector<8x32xf32>
    %c0_9 = arith.constant 0 : index
    %c0_10 = arith.constant 0 : index
    %11 = vector.load %arg6[%c0_9, %c0_10] : memref<24x64xbf16, #tpu.memory_space<vmem>>, vector<24x64xbf16>
    %cst_11 = arith.constant dense<0.000000e+00> : vector<12x64xf32>
    %12 = tpu.matmul %5, %11, %cst_11 {dimension_numbers = #tpu.dot_dimension_numbers<[1], [0], [0], [1], [0, 0, 1, 1], [], []>} : vector<12x24xbf16>, vector<24x64xbf16>, vector<12x64xf32> -> vector<12x64xf32>
    %c0_12 = arith.constant 0 : index
    %c0_13 = arith.constant 0 : index
    %13 = vector.load %arg7[%c0_12, %c0_13] : memref<1x64xf32, #tpu.memory_space<vmem>>, vector<1x64xf32>
    %14 = vector.broadcast %13 : vector<1x64xf32> to vector<12x64xf32>
    %15 = arith.addf %12, %14 : vector<12x64xf32>
    %c0_14 = arith.constant 0 : index
    %c0_15 = arith.constant 0 : index
    %c0_16 = arith.constant 0 : index
    %16 = vector.load %arg8[%c0_14, %c0_15, %c0_16] : memref<1x8x12xbf16, #tpu.memory_space<vmem>>, vector<1x8x12xbf16>
    %17 = vector.shape_cast %16 : vector<1x8x12xbf16> to vector<8x12xbf16>
    %18 = arith.extf %17 : vector<8x12xbf16> to vector<8x12xf32>
    %cst_17 = arith.constant 1.000000e+00 : f32
    %19 = vector.broadcast %cst_17 : f32 to vector<8x12xf32>
    %20 = arith.subf %19, %18 : vector<8x12xf32>
    %cst_18 = arith.constant -1.000000e+04 : f32
    %21 = vector.broadcast %cst_18 : f32 to vector<8x12xf32>
    %22 = arith.mulf %20, %21 : vector<8x12xf32>
    %23 = vector.extract_strided_slice %10 {offsets = [0, 0], sizes = [8, 16], strides = [1, 1]} : vector<8x32xf32> to vector<8x16xf32>
    %24 = arith.truncf %23 : vector<8x16xf32> to vector<8x16xbf16>
    %25 = vector.extract_strided_slice %15 {offsets = [0, 0], sizes = [12, 16], strides = [1, 1]} : vector<12x64xf32> to vector<12x16xf32>
    %26 = arith.truncf %25 : vector<12x16xf32> to vector<12x16xbf16>
    %27 = vector.extract_strided_slice %15 {offsets = [0, 32], sizes = [12, 16], strides = [1, 1]} : vector<12x64xf32> to vector<12x16xf32>
    %28 = arith.truncf %27 : vector<12x16xf32> to vector<12x16xbf16>
    %cst_19 = arith.constant dense<0.000000e+00> : vector<8x12xf32>
    %29 = tpu.matmul %24, %26, %cst_19 {dimension_numbers = #tpu.dot_dimension_numbers<[1], [1], [0], [0], [0, 0, 1, 0], [], []>} : vector<8x16xbf16>, vector<12x16xbf16>, vector<8x12xf32> -> vector<8x12xf32>
    %30 = arith.addf %29, %22 : vector<8x12xf32>
    %cst_20 = arith.constant dense<0xFF800000> : vector<8xf32>
    %31 = vector.multi_reduction <maximumf>, %30, %cst_20 [1] : vector<8x12xf32> to vector<8xf32>
    %32 = vector.shape_cast %31 : vector<8xf32> to vector<8x1xf32>
    %33 = vector.broadcast %32 : vector<8x1xf32> to vector<8x12xf32>
    %34 = arith.subf %30, %33 : vector<8x12xf32>
    %35 = math.exp %34 : vector<8x12xf32>
    %cst_21 = arith.constant dense<0.000000e+00> : vector<8xf32>
    %36 = vector.multi_reduction <add>, %35, %cst_21 [1] : vector<8x12xf32> to vector<8xf32>
    %37 = vector.shape_cast %36 : vector<8xf32> to vector<8x1xf32>
    %38 = tpu.reciprocal %37 {approx = true} : vector<8x1xf32> -> vector<8x1xf32>
    %39 = vector.broadcast %38 : vector<8x1xf32> to vector<8x12xf32>
    %40 = arith.mulf %35, %39 : vector<8x12xf32>
    %41 = arith.truncf %40 : vector<8x12xf32> to vector<8x12xbf16>
    %cst_22 = arith.constant dense<0.000000e+00> : vector<8x16xf32>
    %42 = tpu.matmul %41, %28, %cst_22 {dimension_numbers = #tpu.dot_dimension_numbers<[1], [0], [0], [1], [0, 0, 1, 1], [], []>} : vector<8x12xbf16>, vector<12x16xbf16>, vector<8x16xf32> -> vector<8x16xf32>
    %c0_23 = arith.constant 0 : index
    %c0_24 = arith.constant 0 : index
    %43 = vector.load %arg10[%c0_23, %c0_24] : memref<8x32xf32, #tpu.memory_space<vmem>>, vector<8x16xf32>
    tpu.vector_store %arg10[%c0_23, %c0_24], %42 {strides = array<i32>} : memref<8x32xf32, #tpu.memory_space<vmem>>, vector<8x16xf32>,
    %44 = vector.extract_strided_slice %10 {offsets = [0, 16], sizes = [8, 16], strides = [1, 1]} : vector<8x32xf32> to vector<8x16xf32>
    %45 = arith.truncf %44 : vector<8x16xf32> to vector<8x16xbf16>
    %46 = vector.extract_strided_slice %15 {offsets = [0, 16], sizes = [12, 16], strides = [1, 1]} : vector<12x64xf32> to vector<12x16xf32>
    %47 = arith.truncf %46 : vector<12x16xf32> to vector<12x16xbf16>
    %48 = vector.extract_strided_slice %15 {offsets = [0, 48], sizes = [12, 16], strides = [1, 1]} : vector<12x64xf32> to vector<12x16xf32>
    %49 = arith.truncf %48 : vector<12x16xf32> to vector<12x16xbf16>
    %cst_25 = arith.constant dense<0.000000e+00> : vector<8x12xf32>
    %50 = tpu.matmul %45, %47, %cst_25 {dimension_numbers = #tpu.dot_dimension_numbers<[1], [1], [0], [0], [0, 0, 1, 0], [], []>} : vector<8x16xbf16>, vector<12x16xbf16>, vector<8x12xf32> -> vector<8x12xf32>
    %51 = arith.addf %50, %22 : vector<8x12xf32>
    %cst_26 = arith.constant dense<0xFF800000> : vector<8xf32>
    %52 = vector.multi_reduction <maximumf>, %51, %cst_26 [1] : vector<8x12xf32> to vector<8xf32>
    %53 = vector.shape_cast %52 : vector<8xf32> to vector<8x1xf32>
    %54 = vector.broadcast %53 : vector<8x1xf32> to vector<8x12xf32>
    %55 = arith.subf %51, %54 : vector<8x12xf32>
    %56 = math.exp %55 : vector<8x12xf32>
    %cst_27 = arith.constant dense<0.000000e+00> : vector<8xf32>
    %57 = vector.multi_reduction <add>, %56, %cst_27 [1] : vector<8x12xf32> to vector<8xf32>
    %58 = vector.shape_cast %57 : vector<8xf32> to vector<8x1xf32>
    %59 = tpu.reciprocal %58 {approx = true} : vector<8x1xf32> -> vector<8x1xf32>
    %60 = vector.broadcast %59 : vector<8x1xf32> to vector<8x12xf32>
    %61 = arith.mulf %56, %60 : vector<8x12xf32>
    %62 = arith.truncf %61 : vector<8x12xf32> to vector<8x12xbf16>
    %cst_28 = arith.constant dense<0.000000e+00> : vector<8x16xf32>
    %63 = tpu.matmul %62, %49, %cst_28 {dimension_numbers = #tpu.dot_dimension_numbers<[1], [0], [0], [1], [0, 0, 1, 1], [], []>} : vector<8x12xbf16>, vector<12x16xbf16>, vector<8x16xf32> -> vector<8x16xf32>
    %c0_29 = arith.constant 0 : index
    %c16 = arith.constant 16 : index
    %64 = vector.load %arg10[%c0_29, %c16] : memref<8x32xf32, #tpu.memory_space<vmem>>, vector<8x16xf32>
    tpu.vector_store %arg10[%c0_29, %c16], %63 {strides = array<i32>} : memref<8x32xf32, #tpu.memory_space<vmem>>, vector<8x16xf32>,
    %c0_30 = arith.constant 0 : index
    %c0_31 = arith.constant 0 : index
    %65 = vector.load %arg10[%c0_30, %c0_31] : memref<8x32xf32, #tpu.memory_space<vmem>>, vector<8x32xf32>
    %c0_32 = arith.constant 0 : index
    %c0_33 = arith.constant 0 : index
    %c0_34 = arith.constant 0 : index
    %66 = vector.load %arg9[%c0_32, %c0_33, %c0_34] : memref<1x8x32xf32, #tpu.memory_space<vmem>>, vector<1x8x32xf32>
    %67 = vector.shape_cast %66 : vector<1x8x32xf32> to vector<8x32xf32>
    %68 = vector.shape_cast %65 : vector<8x32xf32> to vector<1x8x32xf32>
    tpu.vector_store %arg9[%c0_32, %c0_33, %c0_34], %68 {strides = array<i32>} : memref<1x8x32xf32, #tpu.memory_space<vmem>>, vector<1x8x32xf32>,
    return
  }
  func.func @transform_0(%arg0: i32, %arg1: i32) -> (i32, i32, i32) {
    %c0_i32 = arith.constant 0 : i32
    %c0_i32_0 = arith.constant 0 : i32
    return %arg0, %arg1, %c0_i32 : i32, i32, i32
  }
  func.func @transform_1(%arg0: i32, %arg1: i32) -> (i32, i32, i32) {
    %c0_i32 = arith.constant 0 : i32
    %c0_i32_0 = arith.constant 0 : i32
    %c0_i32_1 = arith.constant 0 : i32
    return %arg0, %c0_i32, %c0_i32_0 : i32, i32, i32
  }
  func.func @transform_2(%arg0: i32, %arg1: i32) -> (i32, i32) {
    %c0_i32 = arith.constant 0 : i32
    %c0_i32_0 = arith.constant 0 : i32
    %c0_i32_1 = arith.constant 0 : i32
    return %c0_i32, %c0_i32_0 : i32, i32
  }
  func.func @transform_3(%arg0: i32, %arg1: i32) -> (i32, i32) {
    %c0_i32 = arith.constant 0 : i32
    %c0_i32_0 = arith.constant 0 : i32
    %c0_i32_1 = arith.constant 0 : i32
    return %c0_i32, %c0_i32_0 : i32, i32
  }
  func.func @transform_4(%arg0: i32, %arg1: i32) -> (i32, i32) {
    %c0_i32 = arith.constant 0 : i32
    %c0_i32_0 = arith.constant 0 : i32
    %c0_i32_1 = arith.constant 0 : i32
    return %c0_i32, %c0_i32_0 : i32, i32
  }
  func.func @transform_5(%arg0: i32, %arg1: i32) -> (i32, i32) {
    %c0_i32 = arith.constant 0 : i32
    %c0_i32_0 = arith.constant 0 : i32
    %c0_i32_1 = arith.constant 0 : i32
    return %c0_i32, %c0_i32_0 : i32, i32
  }
  func.func @transform_6(%arg0: i32, %arg1: i32) -> (i32, i32, i32) {
    %c0_i32 = arith.constant 0 : i32
    %c0_i32_0 = arith.constant 0 : i32
    return %arg0, %arg1, %c0_i32 : i32, i32, i32
  }
  func.func @transform_7(%arg0: i32, %arg1: i32) -> (i32, i32, i32) {
    %c0_i32 = arith.constant 0 : i32
    %c0_i32_0 = arith.constant 0 : i32
    return %arg0, %arg1, %c0_i32 : i32, i32, i32
  }
}

</mosaic_0001>

<bundles_post_ra>
// kernel: tpu_custom_call.1
= control target key start
LH: loop header
LB: loop body
LE: loop exit
PB: predicated region body
PF: predicated region fallthrough
CT: control target
= control target key end

     0   :  { %12 = vsyncpa [#allocation4], 0  ;;  %s1294_s0 = inlined_call_operand.vmem [shape: f32[2,8,32], index: 0, kind: input, shape index: {}]   ;;  %s1295_s1 = inlined_call_operand.vmem [shape: f32[2,12,24], index: 1, kind: input, shape index: {}]   ;;  %s1296_s2 = inlined_call_operand.vmem [shape: bf16[32,32], index: 2, kind: input, shape index: {}]   ;;  %s1297_s3 = inlined_call_operand.vmem [shape: f32[1,32], index: 3, kind: input, shape index: {}]   ;;  %s1298_s4 = inlined_call_operand.vmem [shape: bf16[24,64], index: 4, kind: input, shape index: {}]   ;;  %s1299_s5 = inlined_call_operand.vmem [shape: f32[1,64], index: 5, kind: input, shape index: {}]   ;;  %s1300_s6 = inlined_call_operand.vmem [shape: bf16[2,8,12], index: 6, kind: input, shape index: {}]   ;;  %s1301_s7 = inlined_call_operand.hbm [shape: f32[2,8,32], index: 7, kind: output, shape index: {}]  }
   0x1   :  { %14 = vsyncpa [#allocation4 + $0x1], 0  ;;  %s1118_s24 = smov 0   ;;  %s1120_s25 = smov 0  }
   0x2   :  { %s1122_s26 = smov 0   ;;  %s1124_s27 = smov 0  }
   0x3   :  { %s1126_s28 = smov 0   ;;  %s1128_s29 = smov 0  }
   0x4 LB: > { %s837_s30 = sadd.s32 4294967295, %s1069_s29   ;;  %s838_s8 = sadd.s32 4294967294, %s1069_s29   ;;  %s1069_s29 = sphi %s1128_s29, %s20_s29   ;;  %s1065_s28 = sphi %s1126_s28, %s1308_s28   ;;  %s1061_s27 = sphi %s1124_s27, %s1307_s27   ;;  %s1057_s26 = sphi %s1122_s26, %s1306_s26   ;;  %s1053_s25 = sphi %s1120_s25, %s1305_s25   ;;  %s1049_s24 = sphi %s1118_s24, %s1304_s24  }
   0x5   : > { %s32_s9 = sadd.s32 1, %s1065_s28  ;;  %s207_s10 = sadd.s32 1, %s1057_s26 }
   0x6   : > { %p34_p0 = scmp.ge.s32.totalorder %s32_s9, 2  ;;  %p217_p1 = scmp.ne.s32.totalorder %s1057_s26, %s1053_s25 }
   0x7   : > { %p218_p2 = scmp.eq.s32.totalorder %s837_s30, 1  ;;  %p223_p3 = scmp.ne.s32.totalorder %s1053_s25, %s1049_s24 }
   0x8   : > { %s1310_s9 = smov (%p34_p0, %s32_s9), 0  ;;  %p224_p5 = scmp.eq.s32.totalorder %s838_s8, 1 }
   0x9   : > { %p1158_p4 = por %p218_p2, %p217_p1  ;;  %s202_s12 = ssub.s32 %s1065_s28, %s1310_s9 }
   0xa   : > { %p841_p6 = scmp.ge.s32.totalorder %s1069_s29, 1  ;;  %p205_p7 = scmp.eq.s32.totalorder %s202_s12, 0 }
   0xb   : > { %p1165_p8 = por %p224_p5, %p223_p3  ;;  %p282_p9 = scmp.lt.s32.totalorder %s1069_s29, 3 }
   0xc   : > { %s1171_s14 = scalar_select %p205_p7, %s1057_s26, %s207_s10  }
   0xd   : > { %p283_p10 = pnand %p841_p6, %p282_p9 }
   0xe   : > { %v979_v0 = vld [vmem:[%s1298_s4] sm:$0xff] (!%p283_p10)   ;;  %v1071_v1 = vmov (!%p283_p10), 0.0   ;;  %v980_v2 = vld [vmem:[%s1298_s4 + $0x8] ss:$0 sps:$4 sm:$0xff] (!%p283_p10)   ;;  %vm443_vm0 = vcmask (!%p283_p10), 1043456   ;;  %vm1072_vm1 = vmmov (!%p283_p10), 0  }
   0xf   : > { %286 = sbr.rel (%p283_p10) target bundleno = 1249 (0x4e1), region = 48  ;;  %886 = vmatprep.subr.bf16.mxu1 (!%p283_p10), %v1071_v1  ;;  %878 = vmatprep.subr.bf16.mxu0 (!%p283_p10), %v1071_v1  ;;  %p328_p11 = scmp.lt.s32.totalorder (!%p283_p10), %s1061_s27, 1  ;;  %v445_v3 = vsel (!%p283_p10), %vm443_vm0, %v980_v2, 0  ;;  %v981_v4 = vld [vmem:[%s1296_s2] sm:$0xff] (!%p283_p10)   ;;  %v982_v5 = vld [vmem:[%s1296_s2 + $0x8] sm:$0xff] (!%p283_p10)   ;;  %vm439_vm2 = vcmask (!%p283_p10), 195584  }
  0x10   : > { %887 = vmatpush3.bf16.msra.mxu1 (!%p283_p10), %v979_v0  ;;  %890 = vmatprep.mubr.msk.bf16.mxu1 (!%p283_p10), %vm1072_vm1, %v1071_v1  ;;  %vm376_vm3 = vcmask (!%p283_p10), 261120   ;;  %v851_v11 = vld [vmem:[%s1299_s5] ss:$0 sm:$0xff] (!%p283_p10)  ;;  %vm494_vm4 = vcmask (!%p283_p10), 130048   ;;  %vm541_vm5 = vcmask (!%p283_p10), 97280   ;;  %vm560_vm6 = vcmask (!%p283_p10), 1045504  }
  0x11   : > { %888 = vmatprep.subr.bf16.mxu1 (!%p283_p10), %v1071_v1  ;;  %882 = vmatprep.mubr.msk.bf16.mxu0 (!%p283_p10), %vm1072_vm1, %v1071_v1  ;;  %v847_v13 = vld [vmem:[%s1297_s3] ss:$0 sm:$0xff] (!%p283_p10)  ;;  %s1075_s16 = smov (!%p283_p10), 80   ;;  %s1076_s17 = smov (!%p283_p10), 16   ;;  %vm720_vm7 = vcmask (!%p283_p10), 261248  }
  0x12   : > { %879 = vmatpush3.bf16.msra.mxu0 (!%p283_p10), %v981_v4  ;;  %s860_s20 = sshll.u32 (!%p283_p10), %s1061_s27, 7 }
  0x13   : > { %880 = vmatprep.subr.bf16.mxu0 (!%p283_p10), %v1071_v1  ;;  %s1246_s10 = scalar_lea.hbm (!%p283_p10), %s1301_s7, %s860_s20 }
  0x14   : > { %889 = vmatpush3.bf16.msra.mxu1 (!%p283_p10), %v445_v3 }
  0x15   : > { %900 = vmatprep.subr.bf16.mxu1 (!%p283_p10), %v1071_v1 }
  0x16   : > { %s1191_s21 = scalar_select %p328_p11, %s1061_s27, 1  ;;  %881 = vmatpush3.bf16.msra.mxu0 %v982_v5 }
  0x17   : > { %894 = vmatprep.subr.bf16.mxu0 %v1071_v1  ;;  %s1077_s27 = smov [#allocation3]  }
  0x18   : > { %s863_s30 = sshll.u32 %s1191_s21, 4  ;;  %s843_s8 = sshll.u32 %s1191_s21, 3 }
  0x19   : > { %s339_s15 = scalar_lea.vmem %s1295_s1, %s863_s30  ;;  %s334_s18 = scalar_lea.vmem %s1294_s0, %s843_s8 }
  0x1a   : > { %v350_v6 = vld [vmem:[%s339_s15] sm:$0xff]  ;;  %v351_v7 = vld [vmem:[%s339_s15 + $0x8] sm:$0xf]  ;;  %s1073_s30 = smov 112   ;;  %s846_s8 = sshll.u32 %s1191_s21, 2 }
  0x1b   : > { %v348_v8 = vld [vmem:[%s334_s18] sm:$0xff]  ;;  %v352_v9 = vpack.c.bf16 %v351_v7, %v350_v6  ;;  %s346_s15 = scalar_lea.vmem %s1300_s6, %s846_s8  ;;  %s1074_s21 = smov 96  }
  0x1c   : > { %v349_v10 = vpack.c.bf16 %v348_v8, %v348_v8  ;;  %v488_v30 = vld [vmem:[%s346_s15] sm:$0xf]  ;;  %s325_s18 = sand.u32 1, %s1053_s25  }
  0x1d   : > { %891 = vmatmul.mubr.msk.bf16.vlgmr.msra.gmra.mrb[0].mxu1 %vm439_vm2, %v352_v9  ;;  %v489_v31 = vunpack.c.l.bf16 %v488_v30  ;;  %s842_s19 = sshll.u32 %s325_s18, 3  ;;  %s725_s12 = scalar_lea.sflag [#allocation4], %s325_s18 }
  0x1e   : > { %883 = vmatmul.mubr.msk.bf16.vlgmr.msra.gmra.mrb[0].mxu0 %vm376_vm3, %v349_v10  ;;  %902 = vmatprep.mubr.msk.bf16.mxu1 %vm1072_vm1, %v1071_v1  ;;  %s327_s22 = scalar_lea.vmem [#allocation3], %s842_s19 }
  0x1f   : > { %896 = vmatprep.mubr.msk.bf16.mxu0 %vm1072_vm1, %v1071_v1  ;;  %v490_v32 = vsub.f32 1.0, %v489_v31  ;;  %s739_s23 = sshll.u32 %s327_s22, 4  ;;  %s1248_s23 = int_to_ptr.vmem [resolvable:$true] %s739_s23 }
  0x20   : > { %s991_s15 = scalar_lea.vmem %s1248_s23, 128 }
  0x21   : > { %v491_v33 = vmul.f32 -10000.0, %v490_v32  ;;  %p992_p12 = scmp.ne.s32.totalorder %s1248_s23, %s991_s15 }
  0x23   : > { %p993_p13 = pnand %p992_p12, %p1158_p4 }
  0x25   : > { %p994_p0 = pneg %p993_p13 }
  0xf0   : > { %v481_v12 = vpop.f32.mrb[0].mxu1 }
  0xf1   : > { %v892_v14 = vpop.f32.mrb[1].mxu1  ;;  %v414_v15 = vpop.f32.mrb[0].mxu0  ;;  %v482_v18 = vadd.f32 %v851_v11, %v481_v12 }
  0xf2   : > { %v484_v16 = vpop.f32.mrb[2].mxu1  ;;  %v884_v17 = vpop.f32.mrb[1].mxu0  ;;  %v415_v21 = vadd.f32 %v847_v13, %v414_v15 }
  0xf3   : > { %v485_v19 = vadd.f32 %v851_v11, %v484_v16  ;;  %v893_v20 = vpop.f32.mrb[3].mxu1  ;;  %v417_v22 = vpop.f32.mrb[2].mxu0 }
  0xf4   : > { %v885_v23 = vpop.f32.mrb[3].mxu0  ;;  %v492_v25 = vpack.c.bf16 %v415_v21, %v415_v21 }
  0xf5   : > { %v493_v24 = vpack.c.bf16 %v485_v19, %v482_v18 }
  0xf7   : > { %608 = vrot.lane.b32.xlu0 %v493_v24, %s1073_s30  ;;  %v499_v26 = vsel %vm494_vm4, %v493_v24, 0 }
  0xf8   : > { %895 = vmatpush3.bf16.xpose.msra.mxu0 %v499_v26 }
  0xf9   : > { %906 = vmatprep.subr.bf16.mxu0 %v1071_v1 }
  0xfb   : > { %606 = vrot.lane.b32.xlu0 %v492_v25, %s1073_s30 }
  0xff   : > { %897 = vmatmul.mubr.msk.bf16.vlgmr.msra.gmra.mrb[4].mxu0 %vm494_vm4, %v492_v25 }
 0x100   : > { %908 = vmatprep.mubr.msk.bf16.mxu0 %vm1072_vm1, %v1071_v1 }
 0x169   : > { %v609_v27 = vpop.permute.xlu0 %608 }
 0x16a   : > { %v614_v28 = vsel %vm494_vm4, %v609_v27, 0 }
 0x16b   : > { %907 = vmatpush3.bf16.xpose.msra.mxu0 %v614_v28 }
 0x16d   : > { %v607_v29 = vpop.permute.xlu0 %606 }
 0x172   : > { %909 = vmatmul.mubr.msk.bf16.vlgmr.msra.gmra.mrb[8].mxu0 %vm494_vm4, %v607_v29 }
 0x1d2   : > { %v535_v34 = vpop.f32.mrb[4].mxu0 }
 0x1d3   : > { %v536_v35 = vadd.f32 %v535_v34, %v491_v33  ;;  %v898_v36 = vpop.f32.mrb[5].mxu0 }
 0x1d4   : > { %v538_v37 = vpop.f32.mrb[6].mxu0 }
 0x1d5   : > { %v899_v38 = vpop.f32.mrb[7].mxu0  ;;  %v542_v39 = vsel %vm541_vm5, %v536_v35, -inf }
 0x1d6   : > { %543 = vmax.xlane.f32.xlu1 %v542_v39 }
 0x245   : > { %v650_v40 = vpop.f32.mrb[8].mxu0 }
 0x246   : > { %v651_v41 = vadd.f32 %v650_v40, %v491_v33  ;;  %v910_v42 = vpop.f32.mrb[9].mxu0 }
 0x247   : > { %v653_v43 = vpop.f32.mrb[10].mxu0 }
 0x248   : > { %v911_v44 = vpop.f32.mrb[11].mxu0  ;;  %v656_v45 = vsel %vm541_vm5, %v651_v41, -inf }
 0x249   : > { %657 = vmax.xlane.f32.xlu1 %v656_v45 }
 0x25a   : > { %555 = vrot.lane.b32.xlu1 %v493_v24, %s1074_s21  ;;  %s995_s21 = sshll.u32 %s1077_s27, 4  ;;  %s996_s21 = int_to_ptr.vmem [resolvable:$false] %s995_s21 }
 0x25b   : > { %p998_p1 = scmp.lt.s32.totalorder %s1248_s23, %s996_s21 }
 0x263   : > { %v544_v46 = vpop.xlane.xlu1 %543 }
 0x264   : > { %v545_v47 = vsub.f32 %v536_v35, %v544_v46 }
 0x266   : > { %v546_v48 = vmul.f32 1.442695, %v545_v47 }
 0x268   : > { %983 = vpow2.f32 %v546_v48 }
 0x272   : > { %v984_v49 = vpop.eup %983 }
 0x273   : > { %v548_v50 = vsel %vm541_vm5, %v984_v49, 0.0 }
 0x274   : > { %549 = vadd.xlane.f32.xlu0 %v548_v50 }
 0x2d6   : > { %v658_v51 = vpop.xlane.xlu1 %657 }
 0x2d7   : > { %v659_v52 = vsub.f32 %v651_v41, %v658_v51 }
 0x2d9   : > { %v660_v53 = vmul.f32 1.442695, %v659_v52 }
 0x2da   : > { %v556_v54 = vpop.permute.xlu1 %555 }
 0x2db   : > { %985 = vpow2.f32 %v660_v53  ;;  %v562_v55 = vsel %vm560_vm6, %v556_v54, 0 }
 0x2dc   : > { %901 = vmatpush3.bf16.msra.mxu1 %v562_v55 }
 0x2dd   : > { %912 = vmatprep.subr.bf16.mxu1 %v1071_v1 }
 0x2e5   : > { %v986_v56 = vpop.eup %985 }
 0x2e6   : > { %v662_v57 = vsel %vm541_vm5, %v986_v56, 0.0 }
 0x2e7   : > { %663 = vadd.xlane.f32.xlu1 %v662_v57 }
 0x2f8   : > { %668 = vrot.lane.b32.xlu1 %v493_v24, %s1075_s16  ;;  %s997_s16 = scalar_lea.vmem %s996_s21, 256 }
 0x2f9   : > { %p999_p2 = scmp.lt.s32.totalorder %s997_s16, %s991_s15 }
 0x2fb   : > { %p1000_p3 = por %p999_p2, %p998_p1 }
 0x2fd   : > { %p1001_p5 = pnand %p1000_p3, %p994_p0 }
 0x301   : > { %v550_v58 = vpop.xlane.xlu0 %549 }
 0x302   : > { %987 = vrcp.f32 %v550_v58 }
 0x30c   : > { %v988_v59 = vpop.eup %987 }
 0x30d   : > { %v552_v60 = vmul.f32 %v988_v59, %v984_v49 }
 0x30f   : > { %v553_v61 = vpack.c.bf16 %v552_v60, %v552_v60 }
 0x311   : > { %903 = vmatmul.mubr.msk.bf16.vlgmr.msra.gmra.mrb[4].mxu1 %vm541_vm5, %v553_v61 }
 0x312   : > { %914 = vmatprep.mubr.msk.bf16.mxu1 %vm1072_vm1, %v1071_v1 }
 0x374   : > { %v664_v62 = vpop.xlane.xlu1 %663 }
 0x375   : > { %989 = vrcp.f32 %v664_v62 }
 0x378   : > { %v669_v63 = vpop.permute.xlu1 %668 }
 0x379   : > { %v674_v0 = vsel %vm560_vm6, %v669_v63, 0 }
 0x37a   : > { %913 = vmatpush3.bf16.msra.mxu1 %v674_v0 }
 0x37f   : > { %v990_v2 = vpop.eup %989 }
 0x380   : > { %v666_v3 = vmul.f32 %v990_v2, %v986_v56 }
 0x382   : > { %v667_v4 = vpack.c.bf16 %v666_v3, %v666_v3 }
 0x384   : > { %915 = vmatmul.mubr.msk.bf16.vlgmr.msra.gmra.mrb[8].mxu1 %vm541_vm5, %v667_v4 }
 0x3e4   : > { %v598_v5 = vpop.f32.mrb[4].mxu1 }
 0x3e5   : > { %604 = vst.msk [vmem:[#allocation2] sm:$0xff] %vm494_vm4, %v598_v5  ;;  %v904_v6 = vpop.f32.mrb[5].mxu1 }
 0x3e6   : > { %v601_v7 = vpop.f32.mrb[6].mxu1 }
 0x3e7   : > { %v905_v8 = vpop.f32.mrb[7].mxu1 }
 0x457   : > { %v710_v1 = vpop.f32.mrb[8].mxu1 }
 0x458   : > { %717 = vrot.lane.b32.xlu1 %v710_v1, %s1076_s17  ;;  %v916_v9 = vpop.f32.mrb[9].mxu1 }
 0x459   : > { %v713_v10 = vpop.f32.mrb[10].mxu1 }
 0x45a   : > { %v917_v11 = vpop.f32.mrb[11].mxu1 }
 0x4ca   : > { %v718_v12 = vpop.permute.xlu1 %717 }
 0x4cb   : > { %721 = vst.msk [vmem:[#allocation2] sm:$0xff] %vm720_vm7, %v718_v12 }
 0x4d2   : > { %v722_v13 = vld [vmem:[#allocation2] sm:$0xff] }
 0x4d3   : > { %723 = vst.msk [vmem:[%s327_s22] sm:$0xff] %vm376_vm3, %v722_v13 }
 0x4d4   : > { %1004 = shalt.err (!%p1001_p5)
}
 0x4d5   : > { %s1005_s17 = scalar_lea.hbm %s1246_s10, 128  ;;  %s1009_s20 = scalar_lea.hbm %s1301_s7, 256 }
 0x4d6   : > { %p1006_p6 = scmp.ne.s32.totalorder %s1246_s10, %s1005_s17  ;;  %p1010_p10 = scmp.lt.u32.totalorder %s1246_s10, %s1301_s7 }
 0x4d7   : > { %p1011_p11 = scmp.lt.u32.totalorder %s1009_s20, %s1005_s17  ;;  %p1013_p13 = scmp.lt.u32.totalorder %s1005_s17, %s1246_s10 }
 0x4d8   : > { %p1007_p7 = pnand %p1006_p6, %p1158_p4 }
 0x4d9   : > { %p1012_p12 = por %p1011_p11, %p1010_p10 }
 0x4da   : > { %p1008_p9 = pneg %p1007_p7 }
 0x4db   : > { %p1014_p0 = por %p1013_p13, %p1012_p12 }
 0x4dd   : > { %p1015_p1 = pnand %p1014_p0, %p1008_p9 }
 0x4df   : > { %1018 = shalt.err (!%p1015_p1)
}
 0x4e0   : > { %918 = dma.vmem_to_hbm [thread:$0]  (%p1158_p4), %s1248_s23, 128, %s1246_s10, %s725_s12  }
 0x4e1 PF: > { %p924_p2 = scmp.ge.s32.totalorder %s1069_s29, 2  ;;  %s751_s8 = sand.u32 1, %s1049_s24  }
 0x4e2   : > { %s752_s15 = scalar_lea.sflag [#allocation4], %s751_s8 }
 0x4e3   : > { %p921_p3 = pnand %p924_p2, %p1165_p8 }
 0x4e5   : > { %1044 = dma.done.wait (!%p921_p3), %s752_s15, 128  }
 0x4e6   : > { %1046 = vsyncadd (!%p921_p3), %s752_s15, 4294967168  ;;  %s20_s29 = sadd.s32 1, %s1069_s29   ;;  %s1304_s24 = smov %s1053_s25 }
 0x4e7   : > { %p17_p5 = scmp.ge.s32.totalorder %s20_s29, 4   ;;  %s1305_s25 = smov %s1057_s26 }
 0x4e8   : > { %s1306_s26 = smov %s1171_s14  ;;  %s1307_s27 = smov %s1065_s28 }
 0x4e9   : > { %s1308_s28 = smov %s1310_s9  ;;  %19 = sbr.rel (!%p17_p5) target bundleno = 4 (0x4), region = 89 }
 0x4f0   :  { %757 = vsyncpa [#allocation4], 1 }
 0x4f1   :  { %759 = vsyncpa [#allocation4 + $0x1], 1 }

</bundles_post_ra>
